<compile_context>
chip_gen: v5e
topology: v5e:2x2
jax: 0.10.0
libtpu: 0.0.40
codegen_flags: <defaults>
</compile_context>

<pallas_src>
import jax
import jax.numpy as jnp
from jax.experimental import pallas as pl
from jax.experimental.pallas import tpu as pltpu


def _se_kernel(x_ref, w1_ref, w2_ref, o_ref):
    # x_ref / o_ref: (Nb, C, HW)   w1_ref: (Cr, C)   w2_ref: (C, Cr)
    x = x_ref[...]                 # native dtype; the only big tensor in the kernel
    hw = x.shape[-1]

    # Squeeze: per-(sample, channel) mean over the lane (HW) axis, f32 accumulation.
    mean = jnp.sum(x, axis=-1, dtype=jnp.float32) * (1.0 / hw)       # (Nb, C)

    # Excitation: sigmoid(relu(mean @ W1^T) @ W2^T), as tiny VPU GEMVs
    # (Cr is tiny, so the MXU would be ~empty; this also avoids weight transposes).
    w1 = w1_ref[...].astype(jnp.float32)                             # (Cr, C)
    w2 = w2_ref[...].astype(jnp.float32)                             # (C, Cr)
    h = jnp.sum(mean[:, None, :] * w1[None, :, :], axis=-1)          # (Nb, Cr)
    h = jnp.maximum(h, 0.0)
    s = jnp.sum(h[:, None, :] * w2[None, :, :], axis=-1)             # (Nb, C)
    s = jax.nn.sigmoid(s)

    # Scale: broadcast the per-channel gate over the HW lane axis; store in
    # native dtype (no f32 copy of the big block).
    o_ref[...] = x * s[:, :, None].astype(x.dtype)


def se_layer(x_nchw, w1, w2, *, block_bytes_target=1 << 20):
    """x_nchw: (N, C, H, W); w1: (Cr, C) [conv1 weight]; w2: (C, Cr) [conv2 weight]."""
    N, C, H, W = x_nchw.shape
    Cr, _ = w1.shape
    HW = H * W

    # NCHW -> (N, C, HW) is a free reshape (no transpose, no extra HBM traffic).
    x_ncl = x_nchw.reshape(N, C, HW)

    # Samples per grid step: largest divisor of N whose block stays near the
    # target size, while keeping >= 2 grid steps when N > 1 (megacore on v7x).
    bytes_per_sample = C * HW * x_nchw.dtype.itemsize
    nb_cap = max(1, block_bytes_target // max(1, bytes_per_sample))
    if N > 1:
        nb_cap = max(1, min(nb_cap, N // 2))
    nb = 1
    for d in range(1, N + 1):
        if N % d == 0 and d <= nb_cap:
            nb = d
    # TODO(synk): add an HW-tiled two-pass path (pool pass + scale pass) for very
    # large feature maps where a single sample's (C, HW) block exceeds a few MB.

    out_ncl = pl.pallas_call(
        _se_kernel,
        out_shape=jax.ShapeDtypeStruct((N, C, HW), x_nchw.dtype),
        grid_spec=pltpu.PrefetchScalarGridSpec(
            num_scalar_prefetch=0,
            grid=(N // nb,),
            in_specs=[
                pl.BlockSpec((nb, C, HW), lambda n: (n, 0, 0)),
                pl.BlockSpec((Cr, C), lambda n: (0, 0)),
                pl.BlockSpec((C, Cr), lambda n: (0, 0)),
            ],
            out_specs=pl.BlockSpec((nb, C, HW), lambda n: (n, 0, 0)),
        ),
        compiler_params=pltpu.CompilerParams(
            dimension_semantics=("parallel",)),
    )(x_ncl, w1, w2)

    # (N, C, HW) -> NCHW is again a free reshape.
    return out_ncl.reshape(N, C, H, W)


def se_layer_ref(x_nchw, w1, w2):
    """Pure-JAX reference mirroring the PyTorch module."""
    mean = jnp.mean(x_nchw, axis=(2, 3))                      # (N, C)
    h = jnp.maximum(mean @ w1.T, 0.0)                         # (N, Cr)
    s = jax.nn.sigmoid(h @ w2.T)                              # (N, C)
    return x_nchw * s[:, :, None, None]


if __name__ == "__main__":
    # channel // ratio must be >= 1 -> C=32, ratio=16, Cr=2.  N=4 so the batched
    # grid still has >= 2 parallel steps (Nb=2, grid=(2,)).
    N, C, H, W = 4, 32, 16, 16
    ratio = 16
    Cr = C // ratio

    key = jax.random.PRNGKey(0)
    kx, k1, k2 = jax.random.split(key, 3)

    x = jax.random.normal(kx, (N, C, H, W), dtype=jnp.float32)
    # Deterministic kaiming-ish init for the two 1x1 conv weights (bias=False).
    w1 = jax.random.normal(k1, (Cr, C), dtype=jnp.float32) * (1.0 / jnp.sqrt(C))
    w2 = jax.random.normal(k2, (C, Cr), dtype=jnp.float32) * (1.0 / jnp.sqrt(Cr))

    out = jax.block_until_ready(se_layer(x, w1, w2))
    ref = jax.block_until_ready(se_layer_ref(x, w1, w2))

    assert out.shape == (N, C, H, W)
    assert jnp.allclose(out, ref, atol=1e-5, rtol=1e-5), "mismatch vs reference"
    print("KERNEL_OK")
</pallas_src>

<mosaic_0001>
module attributes {stable_mosaic.version = 11 : i64} {
  func.func @_se_kernel(%arg0: i32, %arg1: memref<2x32x256xf32, #tpu.memory_space<vmem>>, %arg2: memref<2x32xf32, #tpu.memory_space<vmem>>, %arg3: memref<32x2xf32, #tpu.memory_space<vmem>>, %arg4: memref<2x32x256xf32, #tpu.memory_space<vmem>>) attributes {dimension_semantics = [#tpu.dimension_semantics<parallel>], iteration_bounds = array<i64: 2>, scalar_prefetch = 0 : i64, scratch_operands = 0 : i64, tpu.core_type = #tpu.core_type<tc>, window_params = [{transform_indices = @transform_0, window_bounds = array<i64: 2, 32, 256>}, {pipeline_mode = #tpu.pipeline_mode<synchronous>, transform_indices = @transform_1, window_bounds = array<i64: 2, 32>}, {pipeline_mode = #tpu.pipeline_mode<synchronous>, transform_indices = @transform_2, window_bounds = array<i64: 32, 2>}, {transform_indices = @transform_3, window_bounds = array<i64: 2, 32, 256>}]} {
    %c0 = arith.constant 0 : index
    %c0_0 = arith.constant 0 : index
    %c0_1 = arith.constant 0 : index
    %0 = vector.load %arg1[%c0, %c0_0, %c0_1] : memref<2x32x256xf32, #tpu.memory_space<vmem>>, vector<2x32x256xf32>
    %cst = arith.constant dense<0.000000e+00> : vector<2x32xf32>
    %1 = vector.multi_reduction <add>, %0, %cst [2] : vector<2x32x256xf32> to vector<2x32xf32>
    %cst_2 = arith.constant 3.906250e-03 : f32
    %2 = vector.broadcast %cst_2 : f32 to vector<2x32xf32>
    %3 = arith.mulf %1, %2 : vector<2x32xf32>
    %c0_3 = arith.constant 0 : index
    %c0_4 = arith.constant 0 : index
    %4 = vector.load %arg2[%c0_3, %c0_4] : memref<2x32xf32, #tpu.memory_space<vmem>>, vector<2x32xf32>
    %c0_5 = arith.constant 0 : index
    %c0_6 = arith.constant 0 : index
    %5 = vector.load %arg3[%c0_5, %c0_6] : memref<32x2xf32, #tpu.memory_space<vmem>>, vector<32x2xf32>
    %6 = vector.shape_cast %3 : vector<2x32xf32> to vector<2x1x32xf32>
    %7 = vector.shape_cast %4 : vector<2x32xf32> to vector<1x2x32xf32>
    %8 = vector.broadcast %6 : vector<2x1x32xf32> to vector<2x2x32xf32>
    %9 = vector.broadcast %7 : vector<1x2x32xf32> to vector<2x2x32xf32>
    %10 = arith.mulf %8, %9 : vector<2x2x32xf32>
    %cst_7 = arith.constant dense<0.000000e+00> : vector<2x2xf32>
    %11 = vector.multi_reduction <add>, %10, %cst_7 [2] : vector<2x2x32xf32> to vector<2x2xf32>
    %cst_8 = arith.constant 0.000000e+00 : f32
    %12 = vector.broadcast %cst_8 : f32 to vector<2x2xf32>
    %13 = arith.maximumf %11, %12 : vector<2x2xf32>
    %14 = vector.shape_cast %13 : vector<2x2xf32> to vector<2x1x2xf32>
    %15 = vector.shape_cast %5 : vector<32x2xf32> to vector<1x32x2xf32>
    %16 = vector.broadcast %14 : vector<2x1x2xf32> to vector<2x32x2xf32>
    %17 = vector.broadcast %15 : vector<1x32x2xf32> to vector<2x32x2xf32>
    %18 = arith.mulf %16, %17 : vector<2x32x2xf32>
    %cst_9 = arith.constant dense<0.000000e+00> : vector<2x32xf32>
    %19 = vector.multi_reduction <add>, %18, %cst_9 [2] : vector<2x32x2xf32> to vector<2x32xf32>
    %20 = arith.negf %19 : vector<2x32xf32>
    %21 = math.exp %20 : vector<2x32xf32>
    %cst_10 = arith.constant 1.000000e+00 : f32
    %22 = vector.broadcast %cst_10 : f32 to vector<2x32xf32>
    %23 = arith.addf %22, %21 : vector<2x32xf32>
    %24 = arith.divf %22, %23 : vector<2x32xf32>
    %25 = vector.shape_cast %24 : vector<2x32xf32> to vector<2x32x1xf32>
    %26 = vector.broadcast %25 : vector<2x32x1xf32> to vector<2x32x256xf32>
    %27 = arith.mulf %0, %26 : vector<2x32x256xf32>
    %c0_11 = arith.constant 0 : index
    %c0_12 = arith.constant 0 : index
    %c0_13 = arith.constant 0 : index
    %28 = vector.load %arg4[%c0_11, %c0_12, %c0_13] : memref<2x32x256xf32, #tpu.memory_space<vmem>>, vector<2x32x256xf32>
    tpu.vector_store %arg4[%c0_11, %c0_12, %c0_13], %27 {strides = array<i32>} : memref<2x32x256xf32, #tpu.memory_space<vmem>>, vector<2x32x256xf32>,
    return
  }
  func.func @transform_0(%arg0: i32) -> (i32, i32, i32) {
    %c0_i32 = arith.constant 0 : i32
    %c0_i32_0 = arith.constant 0 : i32
    %c0_i32_1 = arith.constant 0 : i32
    return %arg0, %c0_i32, %c0_i32_0 : i32, i32, i32
  }
  func.func @transform_1(%arg0: i32) -> (i32, i32) {
    %c0_i32 = arith.constant 0 : i32
    %c0_i32_0 = arith.constant 0 : i32
    %c0_i32_1 = arith.constant 0 : i32
    return %c0_i32, %c0_i32_0 : i32, i32
  }
  func.func @transform_2(%arg0: i32) -> (i32, i32) {
    %c0_i32 = arith.constant 0 : i32
    %c0_i32_0 = arith.constant 0 : i32
    %c0_i32_1 = arith.constant 0 : i32
    return %c0_i32, %c0_i32_0 : i32, i32
  }
  func.func @transform_3(%arg0: i32) -> (i32, i32, i32) {
    %c0_i32 = arith.constant 0 : i32
    %c0_i32_0 = arith.constant 0 : i32
    %c0_i32_1 = arith.constant 0 : i32
    return %arg0, %c0_i32, %c0_i32_0 : i32, i32, i32
  }
}

</mosaic_0001>

<bundles_post_ra>
// kernel: tpu_custom_call.1
= control target key start
LH: loop header
LB: loop body
LE: loop exit
PB: predicated region body
PF: predicated region fallthrough
CT: control target
= control target key end

     0   :  { %8 = vsyncpa [#allocation3], 0  ;;  %s2370_s0 = inlined_call_operand.hbm [shape: f32[4,32,256], index: 0, kind: input, shape index: {}]   ;;  %s2371_s1 = inlined_call_operand.vmem [shape: f32[2,32], index: 1, kind: input, shape index: {}]   ;;  %s2372_s2 = inlined_call_operand.vmem [shape: f32[32,2], index: 2, kind: input, shape index: {}]   ;;  %s2373_s3 = inlined_call_operand.hbm [shape: f32[4,32,256], index: 3, kind: output, shape index: {}]  }
   0x1   :  { %10 = vsyncpa [#allocation3 + $0x1], 0 }
   0x2   :  { %11 = vsyncpa [#allocation4], 0 }
   0x3   :  { %13 = vsyncpa [#allocation4 + $0x1], 0  ;;  %s1716_s12 = smov 0   ;;  %s1718_s13 = smov 0  }
   0x4   :  { %s1720_s14 = smov 0   ;;  %s1722_s15 = smov 0  }
   0x5 LB: > { %s1737_s16 = sadd.s32 4294967295, %s1689_s15   ;;  %s1449_s17 = sadd.s32 4294967294, %s1689_s15   ;;  %s1689_s15 = sphi %s1722_s15, %s2383_s15   ;;  %s1685_s14 = sphi %s1720_s14, %s2382_s14   ;;  %s1681_s13 = sphi %s1718_s13, %s2381_s13   ;;  %s1677_s12 = sphi %s1716_s12, %s2380_s12  }
   0x6   : > { %s1741_s18 = sadd.s32 1, %s1689_s15   ;;  %s26_s19 = sadd.s32 1, %s1685_s14 }
   0x7   : > { %s23_s20 = ssub.s32 %s1689_s15, %s1741_s18  ;;  %p33_p0 = scmp.ne.s32.totalorder %s1685_s14, %s1681_s13 }
   0x8   : > { %p24_p1 = scmp.eq.s32.totalorder %s23_s20, 0  ;;  %p34_p2 = scmp.eq.s32.totalorder %s1689_s15, 0 }
   0x9   : > { %p39_p3 = scmp.ne.s32.totalorder %s1681_s13, %s1677_s12  ;;  %p40_p4 = scmp.eq.s32.totalorder %s1737_s16, 0 }
   0xa   : > { %s1753_s21 = scalar_select %p24_p1, %s1685_s14, %s26_s19  }
   0xb   : > { %p1755_p5 = por %p34_p2, %p33_p0  ;;  %p1759_p6 = por %p40_p4, %p39_p3 }
   0xc   : > { %p105_p7 = scmp.eq.s32.totalorder %s1737_s16, 1  ;;  %p111_p8 = scmp.eq.s32.totalorder %s1449_s17, 1 }
   0xd   : > { %p1489_p10 = scmp.lt.s32.totalorder %s1689_s15, 2  ;;  %s137_s26 = sand.u32 1, %s1685_s14  }
   0xe   : > { %p1766_p11 = por %p105_p7, %p33_p0  ;;  %p1770_p12 = por %p111_p8, %p39_p3 }
   0xf   : > { %s1474_s27 = sshll.u32 %s1689_s15, 7  ;;  %s1452_s28 = sshll.u32 %s137_s26, 7 }
  0x10   : > { %s147_s4 = scalar_lea.hbm %s2370_s0, %s1474_s27  ;;  %s141_s6 = scalar_lea.vmem [#allocation2], %s1452_s28 }
  0x11   : > { %s148_s5 = sshll.u32 %s147_s4, 4  ;;  %s150_s7 = sshll.u32 %s141_s6, 4  ;;  %s149_s5 = int_to_ptr.hbm [resolvable:$true] %s148_s5  ;;  %s151_s7 = int_to_ptr.vmem [resolvable:$true] %s150_s7 }
  0x12   : > { %p1781_p13 = pnand %p1489_p10, %p1755_p5  ;;  %p1456_p0 = scmp.ge.s32.totalorder %s1689_s15, 1 }
  0x13   : > { %p158_p1 = scmp.lt.s32.totalorder %s1689_s15, 3  ;;  %s138_s9 = scalar_lea.sflag [#allocation3], %s137_s26 }
  0x14   : > { %s1593_s10 = sshra.s32 %s149_s5, 4  ;;  %p1597_p3 = pneg %p1781_p13  ;;  %s1594_s10 = int_to_ptr.hbm [resolvable:$true] %s1593_s10 }
  0x15   : > { %s1595_s11 = scalar_lea.hbm %s1594_s10, 128  ;;  %s1600_s20 = scalar_lea.hbm %s2370_s0, 256 }
  0x16   : > { %p1596_p2 = scmp.ne.s32.totalorder %s1594_s10, %s1595_s11  ;;  %p1601_p5 = scmp.lt.s32.totalorder %s1594_s10, %s2370_s0 }
  0x17   : > { %p1602_p8 = scmp.lt.s32.totalorder %s1600_s20, %s1595_s11 }
  0x18   : > { %p1598_p4 = pnand %p1597_p3, %p1596_p2 }
  0x19   : > { %p1603_p10 = por %p1602_p8, %p1601_p5 }
  0x1a   : > { %p1599_p7 = pneg %p1598_p4 }
  0x1c   : > { %p1604_p9 = pnand %p1603_p10, %p1599_p7 }
  0x1e   : > { %1607 = shalt.err (!%p1604_p9)
}
  0x1f   : > { %s1691_s26 = smov 256   ;;  %s1692_s28 = smov 16  }
  0x20   : > { %1484 = dma.hbm_to_vmem [thread:$0]  (!%p1781_p13), %s149_s5, 2048, %s151_s7, %s138_s9, %s1691_s26, %s1691_s26, %s1692_s28  }
  0x21   : > { %p159_p2 = pnand %p1456_p0, %p158_p1 }
  0x22   : > { %s1802_s29 = sand.u32 (!%p159_p2), 1, %s1681_s13  }
  0x23   : > { %162 = sbr.rel (%p159_p2) target bundleno = 931 (0x3a3), region = 32  ;;  %s1457_s30 = sshll.u32 (!%p159_p2), %s1802_s29, 7 }
  0x24   : > { %s165_s4 = scalar_lea.sflag (!%p159_p2), [#allocation3], %s1802_s29  ;;  %s1808_s6 = scalar_lea.vmem (!%p159_p2), [#allocation2], %s1457_s30 }
  0x28   : > { %1668 = dma.done.wait (%p1759_p6), %s165_s4, 2048  }
  0x29   : > { %1670 = vsyncadd (%p1759_p6), %s165_s4, 4294965248  ;;  %v249_v0 = vlaneseq  ;;  %v202_v3 = vld [vmem:[%s1808_s6 + $0x40] sm:$0xff]  ;;  %v203_v4 = vld [vmem:[%s1808_s6 + $0x48] sm:$0xff]  ;;  %v1693_v44 = vmov 0   ;;  %vm391_vm0 = vcmask 130112   ;;  %vm395_vm1 = vcmask 195712  }
  0x2a   : > { %v198_v5 = vld [vmem:[%s1808_s6 + $0x20] sm:$0xff]  ;;  %v222_v6 = vadd.f32 %v203_v4, %v202_v3  ;;  %v199_v7 = vld [vmem:[%s1808_s6 + $0x28] sm:$0xff]  ;;  %v204_v13 = vld [vmem:[%s1808_s6 + $0x50] sm:$0xff]  ;;  %vm399_vm2 = vcmask 261312   ;;  %vm422_vm3 = vcmask 1041409   ;;  %vm427_vm4 = vcmask 254976  }
  0x2b   : > { %v1815_v1 = vshrl.u32 %v249_v0, 7  ;;  %v194_v8 = vld [vmem:[%s1808_s6] sm:$0xff]  ;;  %v195_v9 = vld [vmem:[%s1808_s6 + $0x8] sm:$0xff]  ;;  %v216_v10 = vadd.f32 %v199_v7, %v198_v5  ;;  %v205_v14 = vld [vmem:[%s1808_s6 + $0x58] sm:$0xff]  ;;  %vm1081_vm5 = vcmask 1042434   ;;  %vm1083_vm6 = vcmask 1043459  }
  0x2c   : > { %v210_v11 = vadd.f32 %v195_v9, %v194_v8  ;;  %223 = vadd.xlane.f32.xlu2 %v222_v6  ;;  %v200_v15 = vld [vmem:[%s1808_s6 + $0x30] sm:$0xff]  ;;  %v201_v16 = vld [vmem:[%s1808_s6 + $0x38] sm:$0xff]  ;;  %v225_v19 = vadd.f32 %v205_v14, %v204_v13  ;;  %v206_v24 = vld [vmem:[%s1808_s6 + $0x60] sm:$0xff]  ;;  %vm1085_vm7 = vcmask 1044484   ;;  %vm1087_vm8 = vcmask 1045509   ;;  %s2296_s22 = scalar_lea.vmem [#allocation5], %s1457_s30 }
  0x2d   : > { %1528 = vset.pattern.permute.xlu2 %v1815_v1  ;;  %v257_v2 = vadd.s32 8, %v1815_v1  ;;  %v263_v12 = vadd.s32 16, %v1815_v1  ;;  %217 = vadd.xlane.f32.xlu1 %v216_v10  ;;  %v196_v17 = vld [vmem:[%s1808_s6 + $0x10] sm:$0xff]  ;;  %v197_v18 = vld [vmem:[%s1808_s6 + $0x18] sm:$0xff]  ;;  %v219_v20 = vadd.f32 %v201_v16, %v200_v15  ;;  %v207_v25 = vld [vmem:[%s1808_s6 + $0x68] sm:$0xff]  ;;  %v269_v30 = vadd.s32 24, %v1815_v1 }
  0x2e   : > { %211 = vadd.xlane.f32.xlu0 %v210_v11  ;;  %v213_v21 = vadd.f32 %v197_v18, %v196_v17  ;;  %v208_v22 = vld [vmem:[%s1808_s6 + $0x70] sm:$0xff]  ;;  %v209_v23 = vld [vmem:[%s1808_s6 + $0x78] sm:$0xff]  ;;  %v228_v27 = vadd.f32 %v207_v25, %v206_v24  ;;  %v242_v28 = vld [vmem:[%s2371_s1] sm:$0x3]  ;;  %vm1089_vm9 = vcmask 1046534   ;;  %vm1091_vm10 = vcmask 1047559  }
  0x2f   : > { %1529 = vset.pattern.permute.xlu0 %v257_v2  ;;  %1530 = vset.pattern.permute.xlu1 %v263_v12  ;;  %v231_v26 = vadd.f32 %v209_v23, %v208_v22  ;;  %v248_v29 = vperm.slane %v242_v28, 0  ;;  %v1844_v31 = vld [vmem:[%s2372_s2] sm:$0xff]  ;;  %v273_v33 = vperm.slane %v242_v28, 1  ;;  %v1850_v34 = vld [vmem:[%s2372_s2 + $0x10] sm:$0xff]  ;;  %v1859_v38 = vld [vmem:[%s2372_s2 + $0x18] sm:$0xff]  ;;  %vm1150_vm11 = vcmask 15360  }
  0x30   : > { %v489_v32 = vperm.slane %v1844_v31, 7  ;;  %v552_v35 = vperm.slane %v1850_v34, 0  ;;  %v573_v36 = vperm.slane %v1850_v34, 3  ;;  %v594_v37 = vperm.slane %v1850_v34, 6  ;;  %v244_v28 = vld [vmem:[%s2372_s2 + $0x8] sm:$0xff]  ;;  %s1476_s27 = sshll.u32 %s1737_s16, 7 }
  0x31   : > { %v615_v39 = vperm.slane %v1859_v38, 1  ;;  %v636_v40 = vperm.slane %v1859_v38, 4  ;;  %v440_v41 = vperm.slane %v1844_v31, 0  ;;  %v657_v42 = vperm.slane %v1859_v38, 7  ;;  %s1372_s16 = scalar_lea.hbm %s2373_s3, %s1476_s27  ;;  %s1373_s30 = sshll.u32 %s2296_s22, 4  ;;  %s1374_s30 = int_to_ptr.vmem [resolvable:$true] %s1373_s30 }
  0x32   : > { %v447_v43 = vperm.slane %v1844_v31, 1  ;;  %v454_v45 = vperm.slane %v1844_v31, 2  ;;  %v461_v25 = vperm.slane %v1844_v31, 3  ;;  %s1375_s4 = sshll.u32 %s1372_s16, 4  ;;  %s1360_s23 = scalar_lea.sflag [#allocation4], %s1802_s29  ;;  %s1376_s4 = int_to_ptr.hbm [resolvable:$true] %s1375_s4 }
  0x33   : > { %s1637_s5 = sshra.s32 %s1376_s4, 4  ;;  %s1643_s10 = scalar_lea.hbm %s2373_s3, 256  ;;  %s1638_s5 = int_to_ptr.hbm [resolvable:$true] %s1637_s5 }
  0x34   : > { %226 = vadd.xlane.f32.xlu2 %v225_v19  ;;  %s1639_s7 = scalar_lea.hbm %s1638_s5, 128  ;;  %p1644_p0 = scmp.lt.s32.totalorder %s1638_s5, %s2373_s3 }
  0x35   : > { %220 = vadd.xlane.f32.xlu1 %v219_v20  ;;  %p1640_p6 = scmp.ne.s32.totalorder %s1638_s5, %s1639_s7  ;;  %p1645_p1 = scmp.lt.s32.totalorder %s1643_s10, %s1639_s7 }
  0x36   : > { %214 = vadd.xlane.f32.xlu0 %v213_v21 }
  0x37   : > { %p1641_p9 = pnand %p1640_p6, %p1766_p11  ;;  %p1646_p3 = por %p1645_p1, %p1644_p0 }
  0x39   : > { %p1642_p13 = pneg %p1641_p9 }
  0x3b   : > { %p1647_p4 = pnand %p1646_p3, %p1642_p13 }
  0x3d   : > { %232 = vadd.xlane.f32.xlu1 %v231_v26  ;;  %v475_v26 = vperm.slane %v1844_v31, 5 }
  0x3e   : > { %229 = vadd.xlane.f32.xlu0 %v228_v27 }
  0x4c   : > { %253 = vperm.xlu2 %1528, %v248_v29  }
  0x52   : > { %259 = vperm.xlu0 %1529, %v248_v29  }
  0x54   : > { %1531 = vset.pattern.permute.xlu2 %v269_v30 }
  0x56   : > { %265 = vperm.xlu1 %1530, %v248_v29  }
  0x5a   : > { %1541 = vset.pattern.permute.xlu0 %v1815_v1 }
  0x5c   : > { %271 = vperm.xlu2 %1531, %v248_v29   ;;  %v468_v29 = vperm.slane %v1844_v31, 4 }
  0x5e   : > { %1533 = vset.pattern.permute.xlu1 %v257_v2 }
  0x62   : > { %494 = vperm.xlu0 %1541, %v489_v32  }
  0x64   : > { %1532 = vset.pattern.permute.xlu2 %v1815_v1 }
  0x66   : > { %284 = vperm.xlu1 %1533, %v273_v33  }
  0x6a   : > { %557 = vperm.xlu0 %1541, %v552_v35   ;;  %v496_v35 = vperm.slane %v244_v28, 0 }
  0x6c   : > { %278 = vperm.xlu2 %1532, %v273_v33  }
  0x6e   : > { %1535 = vset.pattern.permute.xlu1 %v269_v30  ;;  %v510_v30 = vperm.slane %v244_v28, 2 }
  0x72   : > { %578 = vperm.xlu0 %1541, %v573_v36  }
  0x74   : > { %1534 = vset.pattern.permute.xlu2 %v263_v12 }
  0x76   : > { %296 = vperm.xlu1 %1535, %v273_v33  }
  0x7a   : > { %599 = vperm.xlu0 %1541, %v594_v37  }
  0x7c   : > { %290 = vperm.xlu2 %1534, %v273_v33   ;;  %v524_v33 = vperm.slane %v244_v28, 4 }
  0x7e   : > { %1537 = vset.pattern.permute.xlu1 %v1693_v44 }
  0x82   : > { %620 = vperm.xlu0 %1541, %v615_v39   ;;  %v538_v39 = vperm.slane %v244_v28, 6 }
  0x84   : > { %1536 = vset.pattern.permute.xlu2 %v1815_v1 }
  0x8a   : > { %641 = vperm.xlu0 %1541, %v636_v40   ;;  %v503_v40 = vperm.slane %v244_v28, 1 }
  0x8c   : > { %445 = vperm.xlu2 %1536, %v440_v41  }
  0x92   : > { %662 = vperm.xlu0 %1541, %v657_v42   ;;  %v559_v42 = vperm.slane %v1850_v34, 1 }
  0x94   : > { %452 = vperm.xlu2 %1536, %v447_v43  }
  0x9a   : > { %1542 = vset.pattern.permute.xlu0 %v1693_v44 }
  0x9c   : > { %459 = vperm.xlu2 %1536, %v454_v45   ;;  %v580_v45 = vperm.slane %v1850_v34, 4 }
  0x9f   : > { %v224_v46 = vpop.xlane.xlu2 %223 }
  0xa0   : > { %v218_v51 = vpop.xlane.xlu1 %217  ;;  %v238_v58 = vmul.f32 0.00390625, %v224_v46 }
  0xa1   : > { %v212_v48 = vpop.xlane.xlu0 %211  ;;  %v236_v3 = vmul.f32 0.00390625, %v218_v51 }
  0xa2   : > { %v234_v49 = vmul.f32 0.00390625, %v212_v48  ;;  %v531_v48 = vperm.slane %v244_v28, 5 }
  0xa4   : > { %1538 = vset.pattern.permute.xlu2 %v1693_v44 }
  0xa7   : > { %v227_v47 = vpop.xlane.xlu2 %226 }
  0xa8   : > { %v221_v54 = vpop.xlane.xlu1 %220  ;;  %v239_v13 = vmul.f32 0.00390625, %v227_v47 }
  0xa9   : > { %v215_v53 = vpop.xlane.xlu0 %214  ;;  %v237_v6 = vmul.f32 0.00390625, %v221_v54 }
  0xaa   : > { %v235_v62 = vmul.f32 0.00390625, %v215_v53  ;;  %v622_v53 = vperm.slane %v1859_v38, 2 }
  0xaf   : > { %v254_v50 = vpop.permute.xlu2 %253 }
  0xb0   : > { %v306_v52 = vmul.f32 %v254_v50, %v234_v49  ;;  %v233_v57 = vpop.xlane.xlu1 %232  ;;  %v314_v12 = vmul.f32 %v254_v50, %v238_v58 }
  0xb1   : > { %v230_v56 = vpop.xlane.xlu0 %229  ;;  %v241_v14 = vmul.f32 0.00390625, %v233_v57  ;;  %v643_v57 = vperm.slane %v1859_v38, 5 }
  0xb2   : > { %339 = vperm.xlu0 %1542, %v306_v52   ;;  %v240_v19 = vmul.f32 0.00390625, %v230_v56  ;;  %v545_v52 = vperm.slane %v244_v28, 7 }
  0xb7   : > { %v272_v55 = vpop.permute.xlu2 %271 }
  0xb8   : > { %v309_v7 = vmul.f32 %v272_v55, %v237_v6  ;;  %v317_v17 = vmul.f32 %v272_v55, %v241_v14  ;;  %v566_v55 = vperm.slane %v1850_v34, 2 }
  0xc4   : > { %v260_v63 = vpop.permute.xlu0 %259 }
  0xc5   : > { %v307_v4 = vmul.f32 %v260_v63, %v235_v62  ;;  %v315_v15 = vmul.f32 %v260_v63, %v239_v13  ;;  %v608_v63 = vperm.slane %v1859_v38, 0 }
  0xc6   : > { %v279_v59 = vpop.permute.xlu2 %278 }
  0xc7   : > { %v310_v60 = vmul.f32 %v279_v59, %v234_v49  ;;  %v318_v61 = vmul.f32 %v279_v59, %v238_v58  ;;  %v601_v49 = vperm.slane %v1850_v34, 7  ;;  %v587_v59 = vperm.slane %v1850_v34, 5 }
  0xc8   : > { %v266_v2 = vpop.permute.xlu1 %265 }
  0xc9   : > { %375 = vperm.xlu2 %1538, %v318_v61   ;;  %351 = vperm.xlu1 %1537, %v310_v60   ;;  %v308_v5 = vmul.f32 %v266_v2, %v236_v3  ;;  %v316_v22 = vmul.f32 %v266_v2, %v240_v19 }
  0xd1   : > { %345 = vperm.xlu1 %1537, %v308_v5   ;;  %342 = vperm.xlu2 %1538, %v307_v4   ;;  %v629_v5 = vperm.slane %v1859_v38, 3 }
  0xd4   : > { %v1872_v24 = vpop.permute.xlu0 %494 }
  0xd6   : > { %v291_v10 = vpop.permute.xlu2 %290 }
  0xd7   : > { %v312_v11 = vmul.f32 %v291_v10, %v236_v3  ;;  %v320_v20 = vmul.f32 %v291_v10, %v240_v19  ;;  %v650_v10 = vperm.slane %v1859_v38, 6 }
  0xd8   : > { %v285_v8 = vpop.permute.xlu1 %284 }
  0xd9   : > { %v311_v9 = vmul.f32 %v285_v8, %v235_v62  ;;  %348 = vperm.xlu2 %1538, %v309_v7   ;;  %v319_v23 = vmul.f32 %v285_v8, %v239_v13 }
  0xdb   : > { %354 = vperm.xlu0 %1542, %v311_v9  }
  0xdc   : > { %v1877_v27 = vpop.permute.xlu0 %557 }
  0xe1   : > { %357 = vperm.xlu2 %1538, %v312_v11  }
  0xe3   : > { %363 = vperm.xlu0 %1542, %v314_v12  }
  0xe4   : > { %v1883_v32 = vpop.permute.xlu0 %578 }
  0xe6   : > { %v1886_v36 = vpop.permute.xlu2 %445 }
  0xe8   : > { %v297_v16 = vpop.permute.xlu1 %296 }
  0xe9   : > { %v313_v18 = vmul.f32 %v297_v16, %v237_v6  ;;  %366 = vperm.xlu2 %1538, %v315_v15   ;;  %v321_v21 = vmul.f32 %v297_v16, %v241_v14  ;;  %v1913_v6 = vand.u32 127, %v249_v0 }
  0xeb   : > { %360 = vperm.xlu1 %1537, %v313_v18   ;;  %372 = vperm.xlu0 %1542, %v317_v17   ;;  %v389_v8 = vadd.s32 4294967288, %v1913_v6  ;;  %v393_v13 = vadd.s32 4294967280, %v1913_v6  ;;  %v397_v16 = vadd.s32 4294967272, %v1913_v6 }
  0xec   : > { %v1888_v37 = vpop.permute.xlu0 %599 }
  0xee   : > { %v1890_v41 = vpop.permute.xlu2 %452 }
  0xf1   : > { %384 = vperm.xlu2 %1538, %v321_v21  }
  0xf3   : > { %381 = vperm.xlu0 %1542, %v320_v20   ;;  %369 = vperm.xlu1 %1537, %v316_v22  }
  0xf4   : > { %v1893_v43 = vpop.permute.xlu0 %620 }
  0xf6   : > { %v1896_v46 = vpop.permute.xlu2 %459 }
  0xf9   : > { %1539 = vset.pattern.permute.xlu2 %v1815_v1 }
  0xfb   : > { %378 = vperm.xlu1 %1537, %v319_v23  }
  0xfc   : > { %v1898_v47 = vpop.permute.xlu0 %641 }
 0x101   : > { %466 = vperm.xlu2 %1539, %v461_v25  }
 0x103   : > { %1540 = vset.pattern.permute.xlu1 %v1815_v1  ;;  %v482_v1 = vperm.slane %v1844_v31, 6  ;;  %v517_v31 = vperm.slane %v244_v28, 3 }
 0x104   : > { %v1903_v51 = vpop.permute.xlu0 %662 }
 0x109   : > { %473 = vperm.xlu2 %1539, %v468_v29  }
 0x10b   : > { %480 = vperm.xlu1 %1540, %v475_v26  }
 0x111   : > { %487 = vperm.xlu2 %1539, %v482_v1  }
 0x113   : > { %515 = vperm.xlu1 %1540, %v510_v30  }
 0x119   : > { %501 = vperm.xlu2 %1539, %v496_v35  }
 0x11b   : > { %529 = vperm.xlu1 %1540, %v524_v33  }
 0x121   : > { %508 = vperm.xlu2 %1539, %v503_v40  }
 0x123   : > { %543 = vperm.xlu1 %1540, %v538_v39   ;;  %v1901_v50 = vpop.permute.xlu2 %375 }
 0x124   : > { %v340_v56 = vpop.permute.xlu0 %339  ;;  %v415_v21 = vperm.slane %v1901_v50, %v1913_v6 }
 0x125   : > { %v388_v15 = vperm.slane %v340_v56, %v1913_v6 }
 0x129   : > { %522 = vperm.xlu2 %1539, %v517_v31  }
 0x12b   : > { %564 = vperm.xlu1 %1540, %v559_v42   ;;  %v343_v54 = vpop.permute.xlu2 %342 }
 0x12c   : > { %v390_v14 = vperm.slane %v343_v54, %v389_v8 }
 0x12e   : > { %v392_v22 = vsel %vm391_vm0, %v390_v14, %v388_v15 }
 0x131   : > { %536 = vperm.xlu2 %1539, %v531_v48  }
 0x133   : > { %585 = vperm.xlu1 %1540, %v580_v45   ;;  %v349_v61 = vpop.permute.xlu2 %348 }
 0x134   : > { %v398_v26 = vperm.slane %v349_v61, %v397_v16 }
 0x139   : > { %550 = vperm.xlu2 %1539, %v545_v52  }
 0x13b   : > { %606 = vperm.xlu1 %1540, %v601_v49   ;;  %v352_v58 = vpop.permute.xlu1 %351  ;;  %v358_v3 = vpop.permute.xlu2 %357 }
 0x13c   : > { %v401_v11 = vperm.slane %v352_v58, %v1913_v6  ;;  %v404_v38 = vperm.slane %v358_v3, %v393_v13 }
 0x141   : > { %571 = vperm.xlu2 %1539, %v566_v55  }
 0x143   : > { %627 = vperm.xlu1 %1540, %v622_v53   ;;  %v346_v62 = vpop.permute.xlu1 %345  ;;  %v367_v34 = vpop.permute.xlu2 %366 }
 0x144   : > { %v394_v0 = vperm.slane %v346_v62, %v393_v13  ;;  %v409_v23 = vperm.slane %v367_v34, %v389_v8 }
 0x146   : > { %v396_v28 = vsel %vm395_vm1, %v394_v0, %v392_v22 }
 0x147   : > { %v400_v49 = vsel %vm399_vm2, %v398_v26, %v396_v28 }
 0x149   : > { %592 = vperm.xlu2 %1539, %v587_v59  }
 0x14b   : > { %648 = vperm.xlu1 %1540, %v643_v57   ;;  %v385_v29 = vpop.permute.xlu2 %384 }
 0x14c   : > { %v420_v31 = vperm.slane %v385_v29, %v397_v16 }
 0x14d   : > { %v355_v60 = vpop.permute.xlu0 %354 }
 0x14e   : > { %v402_v12 = vperm.slane %v355_v60, %v389_v8 }
 0x150   : > { %v403_v17 = vsel %vm391_vm0, %v402_v12, %v401_v11 }
 0x151   : > { %613 = vperm.xlu2 %1539, %v608_v63   ;;  %v405_v1 = vsel %vm395_vm1, %v404_v38, %v403_v17 }
 0x153   : > { %1543 = vset.pattern.permute.xlu1 %v1693_v44 }
 0x155   : > { %v364_v2 = vpop.permute.xlu0 %363 }
 0x156   : > { %v408_v18 = vperm.slane %v364_v2, %v1913_v6 }
 0x158   : > { %v410_v33 = vsel %vm391_vm0, %v409_v23, %v408_v18 }
 0x159   : > { %634 = vperm.xlu2 %1539, %v629_v5  }
 0x15b   : > { %v1949_v62 = vpop.permute.xlu2 %466 }
 0x15d   : > { %v361_v4 = vpop.permute.xlu1 %360  ;;  %v373_v7 = vpop.permute.xlu0 %372 }
 0x15e   : > { %v406_v19 = vperm.slane %v361_v4, %v397_v16  ;;  %v413_v45 = vperm.slane %v373_v7, %v397_v16 }
 0x160   : > { %v407_v39 = vsel %vm399_vm2, %v406_v19, %v405_v1 }
 0x161   : > { %655 = vperm.xlu2 %1539, %v650_v10   ;;  %v423_v50 = vsel %vm422_vm3, %v407_v39, %v400_v49 }
 0x162   : > { %v428_v56 = vsel %vm427_vm4, %v423_v50, 0.0 }
 0x163   : > { %v1953_v2 = vpop.permute.xlu2 %473 }
 0x165   : > { %v370_v9 = vpop.permute.xlu1 %369  ;;  %v382_v25 = vpop.permute.xlu0 %381 }
 0x166   : > { %v411_v20 = vperm.slane %v370_v9, %v393_v13  ;;  %v418_v42 = vperm.slane %v382_v25, %v393_v13 }
 0x168   : > { %v412_v40 = vsel %vm395_vm1, %v411_v20, %v410_v33 }
 0x169   : > { %1544 = vset.pattern.permute.xlu2 %v1693_v44  ;;  %v414_v53 = vsel %vm399_vm2, %v413_v45, %v412_v40 }
 0x16b   : > { %v1957_v4 = vpop.permute.xlu2 %487 }
 0x16d   : > { %v379_v30 = vpop.permute.xlu1 %378 }
 0x16e   : > { %v416_v35 = vperm.slane %v379_v30, %v389_v8 }
 0x170   : > { %v417_v48 = vsel %vm391_vm0, %v416_v35, %v415_v21 }
 0x171   : > { %v419_v52 = vsel %vm395_vm1, %v418_v42, %v417_v48 }
 0x172   : > { %v421_v54 = vsel %vm399_vm2, %v420_v31, %v419_v52 }
 0x173   : > { %v424_v55 = vsel %vm422_vm3, %v421_v54, %v414_v53  ;;  %v1959_v7 = vpop.permute.xlu2 %501 }
 0x174   : > { %v431_v57 = vsel %vm427_vm4, %v424_v55, 0.0 }
 0x175   : > { %429 = vadd.xlane.f32.xlu1 %v428_v56  ;;  %432 = vadd.xlane.f32.xlu0 %v431_v57 }
 0x17b   : > { %v1963_v10 = vpop.permute.xlu2 %508 }
 0x17d   : > { %v1939_v44 = vpop.permute.xlu1 %480 }
 0x183   : > { %v1979_v17 = vpop.permute.xlu2 %522 }
 0x185   : > { %v1941_v58 = vpop.permute.xlu1 %515 }
 0x18b   : > { %v1999_v26 = vpop.permute.xlu2 %536 }
 0x18d   : > { %v1943_v59 = vpop.permute.xlu1 %529 }
 0x193   : > { %v2007_v1 = vpop.permute.xlu2 %550 }
 0x195   : > { %v1945_v60 = vpop.permute.xlu1 %543 }
 0x19b   : > { %v2015_v40 = vpop.permute.xlu2 %571 }
 0x19d   : > { %v1947_v61 = vpop.permute.xlu1 %564 }
 0x1a3   : > { %v2025_v49 = vpop.permute.xlu2 %592 }
 0x1a5   : > { %v1951_v63 = vpop.permute.xlu1 %585 }
 0x1ab   : > { %v2037_v56 = vpop.permute.xlu2 %613 }
 0x1ad   : > { %v1955_v3 = vpop.permute.xlu1 %606 }
 0x1b5   : > { %v628_v5 = vpop.permute.xlu1 %627 }
 0x1bd   : > { %v649_v34 = vpop.permute.xlu1 %648 }
 0x1e8   : > { %v430_v8 = vpop.xlane.xlu1 %429  ;;  %v433_v16 = vpop.xlane.xlu0 %432 }
 0x1e9   : > { %v1961_v9 = vmax.f32 %v430_v8, 0.0  ;;  %v1985_v38 = vmax.f32 %v433_v16, 0.0  ;;  %v2045_v8 = vpop.permute.xlu2 %634 }
 0x1eb   : > { %v696_v11 = vmul.f32 %v1886_v36, %v1961_v9  ;;  %v697_v12 = vmul.f32 %v1890_v41, %v1961_v9  ;;  %v698_v13 = vmul.f32 %v1896_v46, %v1961_v9  ;;  %v1972_v14 = vmul.f32 %v628_v5, %v1961_v9 }
 0x1ec   : > { %v1975_v15 = vmul.f32 %v649_v34, %v1961_v9  ;;  %v700_v0 = vmul.f32 %v1953_v2, %v1961_v9  ;;  %v699_v18 = vmul.f32 %v1949_v62, %v1961_v9  ;;  %v703_v19 = vmul.f32 %v1872_v24, %v1961_v9 }
 0x1ed   : > { %828 = vperm.xlu2 %1544, %v697_v12   ;;  %825 = vperm.xlu1 %1543, %v696_v11   ;;  %v1988_v20 = vmul.f32 %v628_v5, %v1985_v38  ;;  %v1991_v21 = vmul.f32 %v649_v34, %v1985_v38  ;;  %v702_v22 = vmul.f32 %v1957_v4, %v1961_v9 }
 0x1ee   : > { %831 = vperm.xlu0 %1542, %v698_v13   ;;  %v701_v23 = vmul.f32 %v1939_v44, %v1961_v9  ;;  %v706_v25 = vmul.f32 %v1941_v58, %v1961_v9  ;;  %v705_v28 = vmul.f32 %v1963_v10, %v1961_v9  ;;  %v704_v29 = vmul.f32 %v1959_v7, %v1961_v9 }
 0x1ef   : > { %v709_v30 = vmul.f32 %v1999_v26, %v1961_v9  ;;  %v708_v33 = vmul.f32 %v1943_v59, %v1961_v9  ;;  %v707_v35 = vmul.f32 %v1979_v17, %v1961_v9  ;;  %v712_v39 = vmul.f32 %v1877_v27, %v1961_v9 }
 0x1f0   : > { %v711_v42 = vmul.f32 %v2007_v1, %v1961_v9  ;;  %v710_v31 = vmul.f32 %v1945_v60, %v1961_v9  ;;  %v715_v45 = vmul.f32 %v1883_v32, %v1961_v9  ;;  %v714_v48 = vmul.f32 %v2015_v40, %v1961_v9 }
 0x1f1   : > { %v713_v50 = vmul.f32 %v1947_v61, %v1961_v9  ;;  %v718_v52 = vmul.f32 %v1888_v37, %v1961_v9  ;;  %v717_v53 = vmul.f32 %v2025_v49, %v1961_v9  ;;  %v716_v54 = vmul.f32 %v1951_v63, %v1961_v9  ;;  %v2052_v13 = vpop.permute.xlu2 %655 }
 0x1f2   : > { %v721_v55 = vmul.f32 %v1893_v43, %v1961_v9  ;;  %v720_v57 = vmul.f32 %v2037_v56, %v1961_v9  ;;  %v719_v5 = vmul.f32 %v1955_v3, %v1961_v9  ;;  %v724_v34 = vmul.f32 %v1898_v47, %v1961_v9 }
 0x1f3   : > { %v723_v11 = vmul.f32 %v2045_v8, %v1961_v9  ;;  %v727_v12 = vmul.f32 %v1903_v51, %v1961_v9  ;;  %v726_v16 = vmul.f32 %v2052_v13, %v1961_v9 }
 0x1f5   : > { %837 = vperm.xlu2 %1544, %v700_v0   ;;  %834 = vperm.xlu1 %1543, %v699_v18   ;;  %v730_v0 = vmul.f32 %v1896_v46, %v1985_v38  ;;  %v729_v18 = vmul.f32 %v1890_v41, %v1985_v38  ;;  %v732_v46 = vmul.f32 %v1953_v2, %v1985_v38 }
 0x1f6   : > { %846 = vperm.xlu0 %1542, %v703_v19   ;;  %v728_v19 = vmul.f32 %v1886_v36, %v1985_v38  ;;  %v735_v41 = vmul.f32 %v1872_v24, %v1985_v38  ;;  %v738_v2 = vmul.f32 %v1941_v58, %v1985_v38  ;;  %v741_v58 = vmul.f32 %v1999_v26, %v1985_v38 }
 0x1fd   : > { %843 = vperm.xlu2 %1544, %v702_v22   ;;  %840 = vperm.xlu1 %1543, %v701_v23   ;;  %v736_v22 = vmul.f32 %v1959_v7, %v1985_v38  ;;  %v739_v23 = vmul.f32 %v1979_v17, %v1985_v38  ;;  %v737_v7 = vmul.f32 %v1963_v10, %v1985_v38 }
 0x1fe   : > { %855 = vperm.xlu0 %1542, %v706_v25   ;;  %v742_v25 = vmul.f32 %v1945_v60, %v1985_v38  ;;  %v740_v10 = vmul.f32 %v1943_v59, %v1985_v38  ;;  %v745_v60 = vmul.f32 %v1947_v61, %v1985_v38  ;;  %v744_v61 = vmul.f32 %v1877_v27, %v1985_v38 }
 0x205   : > { %852 = vperm.xlu2 %1544, %v705_v28   ;;  %849 = vperm.xlu1 %1543, %v704_v29  }
 0x206   : > { %864 = vperm.xlu0 %1542, %v709_v30  }
 0x20d   : > { %861 = vperm.xlu2 %1544, %v708_v33   ;;  %858 = vperm.xlu1 %1543, %v707_v35  }
 0x20e   : > { %873 = vperm.xlu0 %1542, %v712_v39  }
 0x215   : > { %870 = vperm.xlu2 %1544, %v711_v42   ;;  %867 = vperm.xlu1 %1543, %v710_v31  }
 0x216   : > { %882 = vperm.xlu0 %1542, %v715_v45  }
 0x21d   : > { %879 = vperm.xlu2 %1544, %v714_v48   ;;  %876 = vperm.xlu1 %1543, %v713_v50   ;;  %v743_v48 = vmul.f32 %v2007_v1, %v1985_v38  ;;  %v753_v1 = vmul.f32 %v1893_v43, %v1985_v38  ;;  %v747_v43 = vmul.f32 %v1883_v32, %v1985_v38 }
 0x21e   : > { %891 = vperm.xlu0 %1542, %v718_v52   ;;  %v746_v52 = vmul.f32 %v2015_v40, %v1985_v38  ;;  %v752_v40 = vmul.f32 %v2037_v56, %v1985_v38  ;;  %v758_v32 = vmul.f32 %v2052_v13, %v1985_v38  ;;  %v751_v13 = vmul.f32 %v1955_v3, %v1985_v38 }
 0x225   : > { %888 = vperm.xlu2 %1544, %v717_v53   ;;  %885 = vperm.xlu1 %1543, %v716_v54  }
 0x226   : > { %900 = vperm.xlu0 %1542, %v721_v55  }
 0x22d   : > { %897 = vperm.xlu2 %1544, %v720_v57   ;;  %894 = vperm.xlu1 %1543, %v719_v5  }
 0x22e   : > { %909 = vperm.xlu0 %1542, %v724_v34  }
 0x235   : > { %906 = vperm.xlu2 %1544, %v723_v11   ;;  %903 = vperm.xlu1 %1543, %v1972_v14   ;;  %v733_v14 = vmul.f32 %v1939_v44, %v1985_v38  ;;  %v734_v44 = vmul.f32 %v1957_v4, %v1985_v38  ;;  %v755_v11 = vmul.f32 %v2045_v8, %v1985_v38 }
 0x236   : > { %918 = vperm.xlu0 %1542, %v727_v12  }
 0x23d   : > { %915 = vperm.xlu2 %1544, %v726_v16   ;;  %912 = vperm.xlu1 %1543, %v1975_v15   ;;  %v731_v15 = vmul.f32 %v1949_v62, %v1985_v38 }
 0x23e   : > { %927 = vperm.xlu0 %1542, %v730_v0  }
 0x245   : > { %924 = vperm.xlu2 %1544, %v729_v18   ;;  %921 = vperm.xlu1 %1543, %v728_v19   ;;  %v749_v18 = vmul.f32 %v2025_v49, %v1985_v38 }
 0x246   : > { %936 = vperm.xlu0 %1542, %v733_v14   ;;  %v756_v14 = vmul.f32 %v1898_v47, %v1985_v38 }
 0x247   : > { %v829_v9 = vpop.permute.xlu2 %828 }
 0x248   : > { %v1017_v17 = vperm.slane %v829_v9, %v1913_v6  ;;  %v748_v9 = vmul.f32 %v1951_v63, %v1985_v38  ;;  %v759_v63 = vmul.f32 %v1903_v51, %v1985_v38 }
 0x24d   : > { %933 = vperm.xlu2 %1544, %v732_v46   ;;  %930 = vperm.xlu1 %1543, %v731_v15   ;;  %v750_v15 = vmul.f32 %v1888_v37, %v1985_v38 }
 0x24e   : > { %945 = vperm.xlu0 %1542, %v736_v22  }
 0x24f   : > { %v838_v36 = vpop.permute.xlu2 %837 }
 0x250   : > { %v1020_v59 = vperm.slane %v838_v36, %v1913_v6 }
 0x255   : > { %942 = vperm.xlu2 %1544, %v735_v41   ;;  %939 = vperm.xlu1 %1543, %v734_v44  }
 0x256   : > { %954 = vperm.xlu0 %1542, %v739_v23  }
 0x257   : > { %v844_v62 = vpop.permute.xlu2 %843 }
 0x258   : > { %v1022_v57 = vperm.slane %v844_v62, %v1913_v6 }
 0x25d   : > { %951 = vperm.xlu2 %1544, %v738_v2   ;;  %948 = vperm.xlu1 %1543, %v737_v7  }
 0x25e   : > { %963 = vperm.xlu0 %1542, %v742_v25  }
 0x25f   : > { %v2083_v24 = vpop.permute.xlu2 %852  ;;  %v826_v4 = vpop.permute.xlu1 %825 }
 0x260   : > { %v1016_v28 = vperm.slane %v826_v4, %v1913_v6  ;;  %v832_v29 = vpop.permute.xlu0 %831 }
 0x261   : > { %v1018_v33 = vperm.slane %v832_v29, %v1913_v6 }
 0x262   : > { %v1080_v30 = vsel %vm422_vm3, %v1017_v17, %v1016_v28 }
 0x263   : > { %v1082_v31 = vsel %vm1081_vm5, %v1018_v33, %v1080_v30  ;;  %v1025_v30 = vperm.slane %v2083_v24, %v1913_v6 }
 0x265   : > { %960 = vperm.xlu2 %1544, %v741_v58   ;;  %957 = vperm.xlu1 %1543, %v740_v10  }
 0x266   : > { %972 = vperm.xlu0 %1542, %v745_v60  }
 0x267   : > { %v2095_v35 = vpop.permute.xlu2 %861  ;;  %v835_v39 = vpop.permute.xlu1 %834 }
 0x268   : > { %v1019_v26 = vperm.slane %v835_v39, %v1913_v6  ;;  %v2098_v42 = vpop.permute.xlu0 %846 }
 0x269   : > { %v1023_v29 = vperm.slane %v2098_v42, %v1913_v6 }
 0x26a   : > { %v1084_v45 = vsel %vm1083_vm6, %v1019_v26, %v1082_v31 }
 0x26b   : > { %v1086_v50 = vsel %vm1085_vm7, %v1020_v59, %v1084_v45 }
 0x26d   : > { %969 = vperm.xlu2 %1544, %v744_v61   ;;  %966 = vperm.xlu1 %1543, %v743_v48  }
 0x26e   : > { %975 = vperm.xlu0 %1542, %v746_v52  }
 0x26f   : > { %v2110_v53 = vpop.permute.xlu2 %870  ;;  %v841_v54 = vpop.permute.xlu1 %840 }
 0x270   : > { %v1021_v55 = vperm.slane %v841_v54, %v1913_v6  ;;  %v2113_v27 = vpop.permute.xlu0 %855 }
 0x271   : > { %v1026_v31 = vperm.slane %v2113_v27, %v1913_v6 }
 0x272   : > { %v1088_v5 = vsel %vm1087_vm8, %v1021_v55, %v1086_v50 }
 0x273   : > { %v1090_v34 = vsel %vm1089_vm9, %v1022_v57, %v1088_v5 }
 0x274   : > { %v1092_v26 = vsel %vm1091_vm10, %v1023_v29, %v1090_v34 }
 0x275   : > { %996 = vperm.xlu2 %1544, %v753_v1   ;;  %993 = vperm.xlu1 %1543, %v752_v40   ;;  %v1151_v55 = vsel %vm1150_vm11, %v1092_v26, 0.0 }
 0x276   : > { %1002 = vperm.xlu0 %1542, %v755_v11  }
 0x277   : > { %v880_v12 = vpop.permute.xlu2 %879  ;;  %v850_v16 = vpop.permute.xlu1 %849 }
 0x278   : > { %v2124_v0 = vpop.permute.xlu0 %864  ;;  %v1024_v17 = vperm.slane %v850_v16, %v1913_v6  ;;  %v1034_v33 = vperm.slane %v880_v12, %v1913_v6  ;;  %v1028_v12 = vperm.slane %v2095_v35, %v1913_v6 }
 0x279   : > { %v1029_v35 = vperm.slane %v2124_v0, %v1913_v6  ;;  %v1031_v0 = vperm.slane %v2110_v53, %v1913_v6 }
 0x27a   : > { %v1093_v59 = vsel %vm422_vm3, %v1025_v30, %v1024_v17 }
 0x27b   : > { %v1094_v57 = vsel %vm1081_vm5, %v1026_v31, %v1093_v59 }
 0x27d   : > { %978 = vperm.xlu2 %1544, %v747_v43   ;;  %999 = vperm.xlu1 %1543, %v1988_v20  }
 0x27e   : > { %984 = vperm.xlu0 %1542, %v749_v18  }
 0x27f   : > { %v2131_v56 = vpop.permute.xlu2 %888  ;;  %v2133_v8 = vpop.permute.xlu1 %858 }
 0x280   : > { %v874_v19 = vpop.permute.xlu0 %873  ;;  %v1027_v42 = vperm.slane %v2133_v8, %v1913_v6  ;;  %v1037_v8 = vperm.slane %v2131_v56, %v1913_v6 }
 0x281   : > { %v1032_v28 = vperm.slane %v874_v19, %v1913_v6 }
 0x282   : > { %v1095_v5 = vsel %vm1083_vm6, %v1027_v42, %v1094_v57 }
 0x285   : > { %1005 = vperm.xlu2 %1544, %v756_v14   ;;  %981 = vperm.xlu1 %1543, %v748_v9   ;;  %v1096_v14 = vsel %vm1085_vm7, %v1028_v12, %v1095_v5 }
 0x286   : > { %1011 = vperm.xlu0 %1542, %v758_v32  }
 0x287   : > { %v898_v49 = vpop.permute.xlu2 %897  ;;  %v2141_v20 = vpop.permute.xlu1 %867 }
 0x288   : > { %v883_v46 = vpop.permute.xlu0 %882  ;;  %v1040_v4 = vperm.slane %v898_v49, %v1913_v6  ;;  %v1030_v9 = vperm.slane %v2141_v20, %v1913_v6 }
 0x289   : > { %v1035_v48 = vperm.slane %v883_v46, %v1913_v6 }
 0x28d   : > { %987 = vperm.xlu2 %1544, %v750_v15   ;;  %1008 = vperm.xlu1 %1543, %v1991_v21  }
 0x28f   : > { %v907_v47 = vpop.permute.xlu2 %906  ;;  %v877_v22 = vpop.permute.xlu1 %876 }
 0x290   : > { %v2146_v36 = vpop.permute.xlu0 %891  ;;  %v1033_v25 = vperm.slane %v877_v22, %v1913_v6  ;;  %v1043_v39 = vperm.slane %v907_v47, %v1913_v6  ;;  %v1097_v22 = vsel %vm1087_vm8, %v1029_v35, %v1096_v14 }
 0x291   : > { %v1038_v56 = vperm.slane %v2146_v36, %v1913_v6 }
 0x292   : > { %v1100_v10 = vsel %vm422_vm3, %v1033_v25, %v1032_v28 }
 0x293   : > { %v1101_v24 = vsel %vm1081_vm5, %v1034_v33, %v1100_v10 }
 0x294   : > { %v1102_v34 = vsel %vm1083_vm6, %v1035_v48, %v1101_v24 }
 0x295   : > { %1014 = vperm.xlu2 %1544, %v759_v63   ;;  %990 = vperm.xlu1 %1543, %v751_v13   ;;  %v1098_v13 = vsel %vm1089_vm9, %v1030_v9, %v1097_v22 }
 0x297   : > { %v916_v41 = vpop.permute.xlu2 %915  ;;  %v886_v44 = vpop.permute.xlu1 %885 }
 0x298   : > { %v901_v23 = vpop.permute.xlu0 %900  ;;  %v1036_v61 = vperm.slane %v886_v44, %v1913_v6  ;;  %v1046_v40 = vperm.slane %v916_v41, %v1913_v6 }
 0x299   : > { %v1041_v2 = vperm.slane %v901_v23, %v1913_v6 }
 0x29a   : > { %v1103_v16 = vsel %vm1085_vm7, %v1036_v61, %v1102_v34 }
 0x29b   : > { %v1107_v58 = vsel %vm422_vm3, %v1041_v2, %v1040_v4  ;;  %v1104_v15 = vsel %vm1087_vm8, %v1037_v8, %v1103_v16 }
 0x29c   : > { %v1105_v63 = vsel %vm1089_vm9, %v1038_v56, %v1104_v15 }
 0x29f   : > { %v2152_v62 = vpop.permute.xlu2 %924  ;;  %v2154_v37 = vpop.permute.xlu1 %894 }
 0x2a0   : > { %v910_v21 = vpop.permute.xlu0 %909  ;;  %v1039_v49 = vperm.slane %v2154_v37, %v1913_v6  ;;  %v1099_v37 = vsel %vm1091_vm10, %v1031_v0, %v1098_v13 }
 0x2a1   : > { %v1044_v50 = vperm.slane %v910_v21, %v1913_v6  ;;  %v1049_v21 = vperm.slane %v2152_v62, %v1913_v6  ;;  %v1154_v2 = vsel %vm1150_vm11, %v1099_v37, 0.0 }
 0x2a2   : > { %v1106_v44 = vsel %vm1091_vm10, %v1039_v49, %v1105_v63 }
 0x2a3   : > { %v1157_v36 = vsel %vm1150_vm11, %v1106_v44, 0.0 }
 0x2a7   : > { %v2157_v7 = vpop.permute.xlu2 %933  ;;  %v904_v51 = vpop.permute.xlu1 %903 }
 0x2a8   : > { %v1042_v3 = vperm.slane %v904_v51, %v1913_v6  ;;  %v919_v38 = vpop.permute.xlu0 %918  ;;  %v1052_v62 = vperm.slane %v2157_v7, %v1913_v6 }
 0x2a9   : > { %v1047_v43 = vperm.slane %v919_v38, %v1913_v6 }
 0x2aa   : > { %v1108_v60 = vsel %vm1081_vm5, %v1042_v3, %v1107_v58 }
 0x2ab   : > { %v1109_v45 = vsel %vm1083_vm6, %v1043_v39, %v1108_v60 }
 0x2ac   : > { %v1110_v11 = vsel %vm1085_vm7, %v1044_v50, %v1109_v45 }
 0x2af   : > { %v913_v52 = vpop.permute.xlu1 %912  ;;  %v943_v54 = vpop.permute.xlu2 %942 }
 0x2b0   : > { %v1045_v1 = vperm.slane %v913_v52, %v1913_v6  ;;  %1152 = vadd.xlane.f32.xlu0 %v1151_v55  ;;  %v928_v27 = vpop.permute.xlu0 %927  ;;  %v1055_v33 = vperm.slane %v943_v54, %v1913_v6 }
 0x2b1   : > { %v1050_v53 = vperm.slane %v928_v27, %v1913_v6 }
 0x2b2   : > { %v1111_v18 = vsel %vm1087_vm8, %v1045_v1, %v1110_v11 }
 0x2b3   : > { %v1112_v19 = vsel %vm1089_vm9, %v1046_v40, %v1111_v18 }
 0x2b4   : > { %v1113_v32 = vsel %vm1091_vm10, %v1047_v43, %v1112_v19 }
 0x2b5   : > { %v1160_v46 = vsel %vm1150_vm11, %v1113_v32, 0.0 }
 0x2b7   : > { %v922_v47 = vpop.permute.xlu1 %921  ;;  %v952_v41 = vpop.permute.xlu2 %951 }
 0x2b8   : > { %1161 = vadd.xlane.f32.xlu0 %v1160_v46  ;;  %v937_v20 = vpop.permute.xlu0 %936  ;;  %v1048_v23 = vperm.slane %v922_v47, %v1913_v6  ;;  %v1058_v50 = vperm.slane %v952_v41, %v1913_v6 }
 0x2b9   : > { %v1053_v58 = vperm.slane %v937_v20, %v1913_v6 }
 0x2ba   : > { %v1114_v25 = vsel %vm422_vm3, %v1049_v21, %v1048_v23 }
 0x2bb   : > { %v1115_v38 = vsel %vm1081_vm5, %v1050_v53, %v1114_v25 }
 0x2be   : > { %1158 = vadd.xlane.f32.xlu2 %v1157_v36 }
 0x2bf   : > { %v931_v51 = vpop.permute.xlu1 %930  ;;  %1155 = vadd.xlane.f32.xlu1 %v1154_v2  ;;  %v961_v17 = vpop.permute.xlu2 %960 }
 0x2c0   : > { %v1051_v4 = vperm.slane %v931_v51, %v1913_v6  ;;  %v946_v3 = vpop.permute.xlu0 %945  ;;  %v1061_v34 = vperm.slane %v961_v17, %v1913_v6 }
 0x2c1   : > { %v1056_v45 = vperm.slane %v946_v3, %v1913_v6 }
 0x2c2   : > { %v1116_v28 = vsel %vm1083_vm6, %v1051_v4, %v1115_v38 }
 0x2c3   : > { %v1117_v29 = vsel %vm1085_vm7, %v1052_v62, %v1116_v28 }
 0x2c4   : > { %v1118_v39 = vsel %vm1087_vm8, %v1053_v58, %v1117_v29 }
 0x2c7   : > { %v940_v30 = vpop.permute.xlu1 %939  ;;  %v970_v31 = vpop.permute.xlu2 %969 }
 0x2c8   : > { %v1054_v10 = vperm.slane %v940_v30, %v1913_v6  ;;  %v955_v60 = vpop.permute.xlu0 %954  ;;  %v1064_v23 = vperm.slane %v970_v31, %v1913_v6 }
 0x2c9   : > { %v1059_v57 = vperm.slane %v955_v60, %v1913_v6 }
 0x2ca   : > { %v1119_v26 = vsel %vm1089_vm9, %v1054_v10, %v1118_v39 }
 0x2cb   : > { %v1120_v59 = vsel %vm1091_vm10, %v1055_v33, %v1119_v26 }
 0x2cc   : > { %v1163_v42 = vsel %vm1150_vm11, %v1120_v59, 0.0 }
 0x2cd   : > { %1164 = vadd.xlane.f32.xlu1 %v1163_v42 }
 0x2cf   : > { %v949_v7 = vpop.permute.xlu1 %948  ;;  %v997_v52 = vpop.permute.xlu2 %996 }
 0x2d0   : > { %v1057_v24 = vperm.slane %v949_v7, %v1913_v6  ;;  %v964_v61 = vpop.permute.xlu0 %963  ;;  %v1073_v63 = vperm.slane %v997_v52, %v1913_v6 }
 0x2d1   : > { %v1062_v12 = vperm.slane %v964_v61, %v1913_v6 }
 0x2d2   : > { %v1121_v48 = vsel %vm422_vm3, %v1057_v24, %v1056_v45 }
 0x2d3   : > { %v1122_v54 = vsel %vm1081_vm5, %v1058_v50, %v1121_v48 }
 0x2d4   : > { %v1123_v5 = vsel %vm1083_vm6, %v1059_v57, %v1122_v54 }
 0x2d7   : > { %v958_v55 = vpop.permute.xlu1 %957  ;;  %v979_v8 = vpop.permute.xlu2 %978 }
 0x2d8   : > { %v1060_v1 = vperm.slane %v958_v55, %v1913_v6  ;;  %v973_v27 = vpop.permute.xlu0 %972  ;;  %v1067_v38 = vperm.slane %v979_v8, %v1913_v6 }
 0x2d9   : > { %v1065_v13 = vperm.slane %v973_v27, %v1913_v6 }
 0x2da   : > { %v1124_v40 = vsel %vm1085_vm7, %v1060_v1, %v1123_v5 }
 0x2db   : > { %v1125_v11 = vsel %vm1087_vm8, %v1061_v34, %v1124_v40  ;;  %v1128_v36 = vsel %vm422_vm3, %v1065_v13, %v1064_v23 }
 0x2dc   : > { %v1126_v19 = vsel %vm1089_vm9, %v1062_v12, %v1125_v11 }
 0x2df   : > { %v967_v16 = vpop.permute.xlu1 %966  ;;  %v1006_v49 = vpop.permute.xlu2 %1005 }
 0x2e0   : > { %v1063_v43 = vperm.slane %v967_v16, %v1913_v6  ;;  %v976_v18 = vpop.permute.xlu0 %975  ;;  %v1076_v25 = vperm.slane %v1006_v49, %v1913_v6 }
 0x2e1   : > { %v1066_v41 = vperm.slane %v976_v18, %v1913_v6 }
 0x2e2   : > { %v1127_v14 = vsel %vm1091_vm10, %v1063_v43, %v1126_v19 }
 0x2e3   : > { %v1166_v9 = vsel %vm1150_vm11, %v1127_v14, 0.0  ;;  %v1129_v51 = vsel %vm1081_vm5, %v1066_v41, %v1128_v36 }
 0x2e4   : > { %1167 = vadd.xlane.f32.xlu2 %v1166_v9  ;;  %v1130_v58 = vsel %vm1083_vm6, %v1067_v38, %v1129_v51 }
 0x2e7   : > { %v994_v32 = vpop.permute.xlu1 %993  ;;  %v988_v56 = vpop.permute.xlu2 %987 }
 0x2e8   : > { %v1003_v35 = vpop.permute.xlu0 %1002  ;;  %v1072_v47 = vperm.slane %v994_v32, %v1913_v6  ;;  %v1070_v42 = vperm.slane %v988_v56, %v1913_v6 }
 0x2e9   : > { %v1075_v37 = vperm.slane %v1003_v35, %v1913_v6 }
 0x2ea   : > { %v1135_v0 = vsel %vm422_vm3, %v1073_v63, %v1072_v47  ;;  %v1578_v63 = vld [vmem:[%s1808_s6 + $0x8] sm:$0xff] }
 0x2ef   : > { %v1000_v46 = vpop.permute.xlu1 %999  ;;  %v1015_v53 = vpop.permute.xlu2 %1014 }
 0x2f0   : > { %v985_v15 = vpop.permute.xlu0 %984  ;;  %v1074_v22 = vperm.slane %v1000_v46, %v1913_v6  ;;  %v1079_v29 = vperm.slane %v1015_v53, %v1913_v6 }
 0x2f1   : > { %v1069_v33 = vperm.slane %v985_v15, %v1913_v6 }
 0x2f2   : > { %v1136_v44 = vsel %vm1081_vm5, %v1074_v22, %v1135_v0  ;;  %v1577_v22 = vld [vmem:[%s1808_s6] sm:$0xff] }
 0x2f3   : > { %v1137_v21 = vsel %vm1083_vm6, %v1075_v37, %v1136_v44 }
 0x2f4   : > { %v1138_v62 = vsel %vm1085_vm7, %v1076_v25, %v1137_v21 }
 0x2f7   : > { %v982_v20 = vpop.permute.xlu1 %981 }
 0x2f8   : > { %v1012_v2 = vpop.permute.xlu0 %1011  ;;  %v1068_v4 = vperm.slane %v982_v20, %v1913_v6 }
 0x2f9   : > { %v1078_v28 = vperm.slane %v1012_v2, %v1913_v6 }
 0x2fa   : > { %v1131_v10 = vsel %vm1085_vm7, %v1068_v4, %v1130_v58  ;;  %v1579_v58 = vld [vmem:[%s1808_s6 + $0x30] sm:$0xff] }
 0x2fb   : > { %v1132_v59 = vsel %vm1087_vm8, %v1069_v33, %v1131_v10  ;;  %v1580_v10 = vld [vmem:[%s1808_s6 + $0x38] sm:$0xff] }
 0x2fc   : > { %v1133_v24 = vsel %vm1089_vm9, %v1070_v42, %v1132_v59 }
 0x2ff   : > { %v1009_v3 = vpop.permute.xlu1 %1008 }
 0x300   : > { %v1077_v17 = vperm.slane %v1009_v3, %v1913_v6 }
 0x302   : > { %v1139_v30 = vsel %vm1087_vm8, %v1077_v17, %v1138_v62 }
 0x303   : > { %v1140_v60 = vsel %vm1089_vm9, %v1078_v28, %v1139_v30 }
 0x304   : > { %v1141_v39 = vsel %vm1091_vm10, %v1079_v29, %v1140_v60 }
 0x305   : > { %v1172_v26 = vsel %vm1150_vm11, %v1141_v39, 0.0 }
 0x306   : > { %1173 = vadd.xlane.f32.xlu1 %v1172_v26 }
 0x307   : > { %v991_v31 = vpop.permute.xlu1 %990 }
 0x308   : > { %v1071_v7 = vperm.slane %v991_v31, %v1913_v6 }
 0x30a   : > { %v1134_v61 = vsel %vm1091_vm10, %v1071_v7, %v1133_v24 }
 0x30b   : > { %v1169_v45 = vsel %vm1150_vm11, %v1134_v61, 0.0 }
 0x30c   : > { %1170 = vadd.xlane.f32.xlu0 %v1169_v45 }
 0x323   : > { %v1153_v48 = vpop.xlane.xlu0 %1152 }
 0x324   : > { %v1459_v50 = vmul.f32 -1.442695, %v1153_v48 }
 0x326   : > { %1545 = vpow2.f32 %v1459_v50  ;;  %v1581_v50 = vld [vmem:[%s1808_s6 + $0x20] sm:$0xff] }
 0x32b   : > { %v1162_v52 = vpop.xlane.xlu0 %1161 }
 0x32c   : > { %v1546_v54 = vpop.eup %1545  ;;  %v1462_v55 = vmul.f32 -1.442695, %v1162_v52 }
 0x32d   : > { %v1199_v57 = vadd.f32 1.0, %v1546_v54  ;;  %v1582_v54 = vld [vmem:[%s1808_s6 + $0x28] sm:$0xff] }
 0x32e   : > { %1547 = vpow2.f32 %v1462_v55 }
 0x32f   : > { %1549 = vrcp.f32 %v1199_v57  ;;  %v1218_v18 = vand.u32 2147483648, %v1199_v57  ;;  %v1216_v19 = vand.u32 2147483647, %v1199_v57  ;;  %vm1212_vm13 = vweird.f32 %v1199_v57 }
 0x331   : > { %v1159_v1 = vpop.xlane.xlu2 %1158  ;;  %v1219_v49 = vor.u32 1.1754944e-38, %v1218_v18  ;;  %vm1217_vm15 = vcmp.eq.f32.partialorder %v1216_v19, 8.507059e+37 }
 0x332   : > { %v1461_v27 = vmul.f32 -1.442695, %v1159_v1  ;;  %v1156_v5 = vpop.xlane.xlu1 %1155 }
 0x333   : > { %v1460_v6 = vmul.f32 -1.442695, %v1156_v5  ;;  %v1583_v5 = vld [vmem:[%s1808_s6 + $0x10] sm:$0xff] }
 0x334   : > { %1551 = vpow2.f32 %v1461_v27  ;;  %v1548_v40 = vpop.eup %1547 }
 0x335   : > { %v1550_v34 = vpop.eup %1549  ;;  %v1202_v11 = vadd.f32 1.0, %v1548_v40  ;;  %1553 = vpow2.f32 %v1460_v6  ;;  %v1584_v40 = vld [vmem:[%s1808_s6 + $0x18] sm:$0xff] }
 0x336   : > { %v1208_v12 = vmul.f32 %v1550_v34, %v1199_v57  ;;  %vm1213_vm12 = vweird.f32 %v1550_v34 }
 0x337   : > { %1555 = vrcp.f32 %v1202_v11  ;;  %vm1214_vm14 = vmor %vm1212_vm13, %vm1213_vm12  ;;  %v1263_v44 = vand.u32 2147483648, %v1202_v11  ;;  %v1261_v21 = vand.u32 2147483647, %v1202_v11  ;;  %vm1257_vm1 = vweird.f32 %v1202_v11 }
 0x338   : > { %v1209_v16 = vsub.f32 1.0, %v1208_v12 }
 0x339   : > { %v1264_v53 = vor.u32 1.1754944e-38, %v1263_v44  ;;  %vm1262_vm3 = vcmp.eq.f32.partialorder %v1261_v21, 8.507059e+37 }
 0x33a   : > { %v1552_v43 = vpop.eup %1551  ;;  %v1210_v8 = vmul.f32 %v1550_v34, %v1209_v16 }
 0x33b   : > { %v2286_v14 = vadd.f32 1.0, %v1552_v43  ;;  %v1554_v9 = vpop.eup %1553 }
 0x33c   : > { %v1211_v32 = vadd.f32 %v1550_v34, %v1210_v8  ;;  %v2289_v46 = vadd.f32 1.0, %v1554_v9 }
 0x33d   : > { %1557 = vrcp.f32 %v2286_v14  ;;  %v1556_v35 = vpop.eup %1555  ;;  %v1248_v3 = vand.u32 2147483648, %v2286_v14  ;;  %v1246_v29 = vand.u32 2147483647, %v2286_v14  ;;  %vm1242_vm5 = vweird.f32 %v2286_v14 }
 0x33e   : > { %v1215_v15 = vsel %vm1214_vm14, %v1550_v34, %v1211_v32  ;;  %v1253_v56 = vmul.f32 %v1556_v35, %v1202_v11  ;;  %1559 = vrcp.f32 %v2289_v46  ;;  %vm1258_vm0 = vweird.f32 %v1556_v35 }
 0x33f   : > { %v1220_v47 = vsel %vm1217_vm15, %v1219_v49, %v1215_v15  ;;  %vm1259_vm2 = vmor %vm1257_vm1, %vm1258_vm0  ;;  %v1249_v59 = vor.u32 1.1754944e-38, %v1248_v3  ;;  %v1233_v42 = vand.u32 2147483648, %v2289_v46  ;;  %v1231_v7 = vand.u32 2147483647, %v2289_v46 }
 0x340   : > { %v1327_v20 = vmul.f32 %v1577_v22, %v1220_v47  ;;  %v1328_v13 = vmul.f32 %v1578_v63, %v1220_v47  ;;  %v1254_v0 = vsub.f32 1.0, %v1253_v56  ;;  %v1165_v41 = vpop.xlane.xlu1 %1164  ;;  %vm1247_vm8 = vcmp.eq.f32.partialorder %v1246_v29, 8.507059e+37  ;;  %v1586_v56 = vld [vmem:[%s1808_s6 + $0x48] sm:$0xff] }
 0x341   : > { %v1463_v23 = vmul.f32 -1.442695, %v1165_v41  ;;  %vm1227_vm9 = vweird.f32 %v2289_v46  ;;  %v1234_v57 = vor.u32 1.1754944e-38, %v1233_v42  ;;  %vm1232_vm11 = vcmp.eq.f32.partialorder %v1231_v7, 8.507059e+37 }
 0x342   : > { %1343 = vst [vmem:[%s2296_s22] sm:$0xff] %v1327_v20  ;;  %v1255_v36 = vmul.f32 %v1556_v35, %v1254_v0 }
 0x343   : > { %v1558_v37 = vpop.eup %1557  ;;  %1344 = vst [vmem:[%s2296_s22 + $0x8] sm:$0xff] %v1328_v13  ;;  %1561 = vpow2.f32 %v1463_v23 }
 0x344   : > { %v1238_v2 = vmul.f32 %v1558_v37, %v2286_v14  ;;  %v1256_v25 = vadd.f32 %v1556_v35, %v1255_v36  ;;  %v1560_v51 = vpop.eup %1559  ;;  %vm1243_vm4 = vweird.f32 %v1558_v37 }
 0x345   : > { %v1223_v17 = vmul.f32 %v1560_v51, %v2289_v46  ;;  %vm1244_vm6 = vmor %vm1242_vm5, %vm1243_vm4  ;;  %vm1228_vm7 = vweird.f32 %v1560_v51  ;;  %v1585_v46 = vld [vmem:[%s1808_s6 + $0x40] sm:$0xff] }
 0x346   : > { %v1239_v4 = vsub.f32 1.0, %v1238_v2  ;;  %v1260_v38 = vsel %vm1259_vm2, %v1556_v35, %v1256_v25  ;;  %vm1229_vm10 = vmor %vm1227_vm9, %vm1228_vm7  ;;  %v1587_v25 = vld [vmem:[%s1808_s6 + $0x50] sm:$0xff] }
 0x347   : > { %v1265_v28 = vsel %vm1262_vm3, %v1264_v53, %v1260_v38  ;;  %v1224_v33 = vsub.f32 1.0, %v1223_v17  ;;  %v1588_v53 = vld [vmem:[%s1808_s6 + $0x58] sm:$0xff] }
 0x348   : > { %v1240_v62 = vmul.f32 %v1558_v37, %v1239_v4  ;;  %v1333_v30 = vmul.f32 %v1579_v58, %v1265_v28  ;;  %v1334_v60 = vmul.f32 %v1580_v10, %v1265_v28 }
 0x349   : > { %v1562_v39 = vpop.eup %1561  ;;  %v1225_v31 = vmul.f32 %v1560_v51, %v1224_v33 }
 0x34a   : > { %v1241_v26 = vadd.f32 %v1558_v37, %v1240_v62  ;;  %1349 = vst [vmem:[%s2296_s22 + $0x30] sm:$0xff] %v1333_v30  ;;  %v1203_v24 = vadd.f32 1.0, %v1562_v39 }
 0x34b   : > { %1350 = vst [vmem:[%s2296_s22 + $0x38] sm:$0xff] %v1334_v60  ;;  %v1226_v48 = vadd.f32 %v1560_v51, %v1225_v31 }
 0x34c   : > { %v1245_v61 = vsel %vm1244_vm6, %v1558_v37, %v1241_v26  ;;  %1563 = vrcp.f32 %v1203_v24  ;;  %v1278_v43 = vand.u32 2147483648, %v1203_v24  ;;  %v1276_v8 = vand.u32 2147483647, %v1203_v24 }
 0x34d   : > { %v1250_v45 = vsel %vm1247_vm8, %v1249_v59, %v1245_v61  ;;  %v1230_v1 = vsel %vm1229_vm10, %v1560_v51, %v1226_v48  ;;  %vm1272_vm13 = vweird.f32 %v1203_v24 }
 0x34e   : > { %v1331_v52 = vmul.f32 %v1581_v50, %v1250_v45  ;;  %v1332_v55 = vmul.f32 %v1582_v54, %v1250_v45  ;;  %v1235_v27 = vsel %vm1232_vm11, %v1234_v57, %v1230_v1  ;;  %v1279_v32 = vor.u32 1.1754944e-38, %v1278_v43  ;;  %v1589_v54 = vld [vmem:[%s1808_s6 + $0x70] sm:$0xff]  ;;  %v1590_v57 = vld [vmem:[%s1808_s6 + $0x78] sm:$0xff] }
 0x34f   : > { %v1329_v6 = vmul.f32 %v1583_v5, %v1235_v27  ;;  %v1330_v34 = vmul.f32 %v1584_v40, %v1235_v27  ;;  %vm1277_vm15 = vcmp.eq.f32.partialorder %v1276_v8, 8.507059e+37 }
 0x350   : > { %1347 = vst [vmem:[%s2296_s22 + $0x20] sm:$0xff] %v1331_v52 }
 0x351   : > { %1348 = vst [vmem:[%s2296_s22 + $0x28] sm:$0xff] %v1332_v55 }
 0x352   : > { %v1564_v11 = vpop.eup %1563  ;;  %1345 = vst [vmem:[%s2296_s22 + $0x10] sm:$0xff] %v1329_v6 }
 0x353   : > { %1346 = vst [vmem:[%s2296_s22 + $0x18] sm:$0xff] %v1330_v34  ;;  %v1268_v12 = vmul.f32 %v1564_v11, %v1203_v24  ;;  %vm1273_vm12 = vweird.f32 %v1564_v11 }
 0x354   : > { %vm1274_vm14 = vmor %vm1272_vm13, %vm1273_vm12 }
 0x355   : > { %v1269_v16 = vsub.f32 1.0, %v1268_v12 }
 0x357   : > { %v1270_v18 = vmul.f32 %v1564_v11, %v1269_v16  ;;  %v1168_v19 = vpop.xlane.xlu2 %1167  ;;  %v1592_v16 = vld [vmem:[%s1808_s6 + $0x68] sm:$0xff] }
 0x358   : > { %v1464_v14 = vmul.f32 -1.442695, %v1168_v19 }
 0x359   : > { %v1271_v9 = vadd.f32 %v1564_v11, %v1270_v18 }
 0x35a   : > { %1565 = vpow2.f32 %v1464_v14 }
 0x35b   : > { %v1275_v35 = vsel %vm1274_vm14, %v1564_v11, %v1271_v9  ;;  %v1591_v11 = vld [vmem:[%s1808_s6 + $0x60] sm:$0xff] }
 0x35c   : > { %v1280_v49 = vsel %vm1277_vm15, %v1279_v32, %v1275_v35 }
 0x35d   : > { %v1335_v15 = vmul.f32 %v1585_v46, %v1280_v49  ;;  %v1336_v47 = vmul.f32 %v1586_v56, %v1280_v49 }
 0x35f   : > { %1351 = vst [vmem:[%s2296_s22 + $0x40] sm:$0xff] %v1335_v15 }
 0x360   : > { %v1566_v22 = vpop.eup %1565  ;;  %1352 = vst [vmem:[%s2296_s22 + $0x48] sm:$0xff] %v1336_v47 }
 0x361   : > { %v1204_v20 = vadd.f32 1.0, %v1566_v22 }
 0x363   : > { %1567 = vrcp.f32 %v1204_v20  ;;  %v1293_v41 = vand.u32 2147483648, %v1204_v20  ;;  %v1291_v23 = vand.u32 2147483647, %v1204_v20  ;;  %vm1287_vm1 = vweird.f32 %v1204_v20 }
 0x365   : > { %v1294_v36 = vor.u32 1.1754944e-38, %v1293_v41  ;;  %vm1292_vm3 = vcmp.eq.f32.partialorder %v1291_v23, 8.507059e+37 }
 0x369   : > { %v1568_v63 = vpop.eup %1567 }
 0x36a   : > { %v1283_v13 = vmul.f32 %v1568_v63, %v1204_v20  ;;  %vm1288_vm0 = vweird.f32 %v1568_v63 }
 0x36b   : > { %vm1289_vm2 = vmor %vm1287_vm1, %vm1288_vm0 }
 0x36c   : > { %v1284_v0 = vsub.f32 1.0, %v1283_v13 }
 0x36e   : > { %v1285_v44 = vmul.f32 %v1568_v63, %v1284_v0 }
 0x370   : > { %v1286_v37 = vadd.f32 %v1568_v63, %v1285_v44 }
 0x372   : > { %v1290_v21 = vsel %vm1289_vm2, %v1568_v63, %v1286_v37 }
 0x373   : > { %v1295_v2 = vsel %vm1292_vm3, %v1294_v36, %v1290_v21 }
 0x374   : > { %v1337_v51 = vmul.f32 %v1587_v25, %v1295_v2  ;;  %v1338_v4 = vmul.f32 %v1588_v53, %v1295_v2 }
 0x376   : > { %1353 = vst [vmem:[%s2296_s22 + $0x50] sm:$0xff] %v1337_v51 }
 0x377   : > { %1354 = vst [vmem:[%s2296_s22 + $0x58] sm:$0xff] %v1338_v4 }
 0x379   : > { %v1174_v3 = vpop.xlane.xlu1 %1173 }
 0x37a   : > { %v1466_v38 = vmul.f32 -1.442695, %v1174_v3 }
 0x37c   : > { %1569 = vpow2.f32 %v1466_v38 }
 0x37f   : > { %v1171_v17 = vpop.xlane.xlu0 %1170 }
 0x380   : > { %v1465_v28 = vmul.f32 -1.442695, %v1171_v17 }
 0x382   : > { %v1570_v62 = vpop.eup %1569  ;;  %1571 = vpow2.f32 %v1465_v28 }
 0x383   : > { %v1206_v29 = vadd.f32 1.0, %v1570_v62 }
 0x385   : > { %1573 = vrcp.f32 %v1206_v29  ;;  %v1323_v39 = vand.u32 2147483648, %v1206_v29  ;;  %v1321_v59 = vand.u32 2147483647, %v1206_v29  ;;  %vm1317_vm5 = vweird.f32 %v1206_v29 }
 0x387   : > { %v1324_v24 = vor.u32 1.1754944e-38, %v1323_v39  ;;  %vm1322_vm7 = vcmp.eq.f32.partialorder %v1321_v59, 8.507059e+37 }
 0x388   : > { %v1572_v58 = vpop.eup %1571 }
 0x389   : > { %v1205_v30 = vadd.f32 1.0, %v1572_v58 }
 0x38b   : > { %v1574_v10 = vpop.eup %1573  ;;  %1575 = vrcp.f32 %v1205_v30  ;;  %v1306_v50 = vand.u32 2147483647, %v1205_v30  ;;  %v1308_v52 = vand.u32 2147483648, %v1205_v30  ;;  %vm1302_vm9 = vweird.f32 %v1205_v30 }
 0x38c   : > { %v1313_v60 = vmul.f32 %v1574_v10, %v1206_v29  ;;  %vm1318_vm4 = vweird.f32 %v1574_v10 }
 0x38d   : > { %vm1319_vm6 = vmor %vm1317_vm5, %vm1318_vm4  ;;  %v1309_v6 = vor.u32 1.1754944e-38, %v1308_v52  ;;  %vm1307_vm11 = vcmp.eq.f32.partialorder %v1306_v50, 8.507059e+37 }
 0x38e   : > { %v1314_v33 = vsub.f32 1.0, %v1313_v60 }
 0x390   : > { %v1315_v26 = vmul.f32 %v1574_v10, %v1314_v33 }
 0x391   : > { %v1576_v42 = vpop.eup %1575 }
 0x392   : > { %v1316_v31 = vadd.f32 %v1574_v10, %v1315_v26  ;;  %v1298_v7 = vmul.f32 %v1576_v42, %v1205_v30  ;;  %vm1303_vm8 = vweird.f32 %v1576_v42 }
 0x393   : > { %vm1304_vm10 = vmor %vm1302_vm9, %vm1303_vm8 }
 0x394   : > { %v1320_v61 = vsel %vm1319_vm6, %v1574_v10, %v1316_v31  ;;  %v1299_v45 = vsub.f32 1.0, %v1298_v7 }
 0x395   : > { %v1325_v48 = vsel %vm1322_vm7, %v1324_v24, %v1320_v61 }
 0x396   : > { %v1341_v55 = vmul.f32 %v1589_v54, %v1325_v48  ;;  %v1342_v1 = vmul.f32 %v1590_v57, %v1325_v48  ;;  %v1300_v27 = vmul.f32 %v1576_v42, %v1299_v45 }
 0x398   : > { %1357 = vst [vmem:[%s2296_s22 + $0x70] sm:$0xff] %v1341_v55  ;;  %v1301_v5 = vadd.f32 %v1576_v42, %v1300_v27 }
 0x399   : > { %1358 = vst [vmem:[%s2296_s22 + $0x78] sm:$0xff] %v1342_v1 }
 0x39a   : > { %v1305_v40 = vsel %vm1304_vm10, %v1576_v42, %v1301_v5 }
 0x39b   : > { %v1310_v34 = vsel %vm1307_vm11, %v1309_v6, %v1305_v40 }
 0x39c   : > { %v1339_v12 = vmul.f32 %v1591_v11, %v1310_v34  ;;  %v1340_v43 = vmul.f32 %v1592_v16, %v1310_v34 }
 0x39e   : > { %1355 = vst [vmem:[%s2296_s22 + $0x60] sm:$0xff] %v1339_v12 }
 0x39f   : > { %1356 = vst [vmem:[%s2296_s22 + $0x68] sm:$0xff] %v1340_v43 }
 0x3a0   : > { %1650 = shalt.err (!%p1647_p4)
}
 0x3a1   : > { %s1694_s29 = smov 256   ;;  %s1695_s6 = smov 16  }
 0x3a2   : > { %1479 = dma.vmem_to_hbm [thread:$0]  (%p1766_p11), %s1374_s30, 2048, %s1376_s4, %s1360_s23, %s1694_s29, %s1694_s29, %s1695_s6  }
 0x3a3 PF: > { %s1390_s19 = sand.u32 1, %s1677_s12   ;;  %p2379_p7 = scmp.ge.s32.totalorder %s1689_s15, 2 }
 0x3a4   : > { %s1391_s20 = scalar_lea.sflag [#allocation4], %s1390_s19 }
 0x3a5   : > { %p1486_p5 = pnand %p2379_p7, %p1770_p12 }
 0x3a7   : > { %p1487_p8 = pneg %p1486_p5 }
 0x3a9   : > { %1672 = dma.done.wait (%p1487_p8), %s1391_s20, 2048  }
 0x3aa   : > { %1674 = vsyncadd (%p1487_p8), %s1391_s20, 4294965248  ;;  %p16_p10 = scmp.ge.s32.totalorder %s1741_s18, 4   ;;  %s2380_s12 = smov %s1681_s13 }
 0x3ab   : > { %s2381_s13 = smov %s1685_s14  ;;  %s2382_s14 = smov %s1753_s21 }
 0x3ac   : > { %s2383_s15 = smov %s1741_s18  ;;  %18 = sbr.rel (!%p16_p10) target bundleno = 5 (0x5), region = 77 }
 0x3b1   :  { %1397 = vsyncpa [#allocation3], 1 }
 0x3b2   :  { %1399 = vsyncpa [#allocation3 + $0x1], 1 }
 0x3b3   :  { %1400 = vsyncpa [#allocation4], 1 }
 0x3b4   :  { %1402 = vsyncpa [#allocation4 + $0x1], 1 }

</bundles_post_ra>
